<compile_context>
chip_gen: v5e
topology: v5e:2x2
jax: 0.10.0
libtpu: 0.0.40
codegen_flags: <defaults>
</compile_context>

<pallas_src>
import jax
import jax.numpy as jnp
from jax.experimental import pallas as pl
from jax.experimental.pallas import tpu as pltpu


def _round_up(n: int, m: int) -> int:
    return ((n + m - 1) // m) * m


# VMEM policy: raise the scoped limit above the v5e/v6e defaults (16/32 MiB)
# while staying well under v7x's 64 MiB physical; size the batch tile so the
# whole working set fits inside a ~40 MiB budget.
_VMEM_LIMIT_BYTES = 48 * 1024 * 1024
_VMEM_BUDGET_BYTES = 40 * 1024 * 1024
_TARGET_GRID_STEPS = 8    # keep >= 2 grid steps so v7x can shard across TCs
_MAX_TILE_B = 2048


def deep_system_kernel(x_ref,
                       w1_ref, b1_ref,    # processor Linear(input, hidden)
                       w2_ref, b2_ref,    # processor Linear(hidden, hidden//2)
                       w3_ref, b3_ref,    # threat    Linear(hidden//2, hidden//4)
                       w4_ref,            # threat    Linear(hidden//4, 1) as (1, h4) row
                       b4_ref,            # SMEM scalar (1,)
                       feats_ref, threat_ref):
    # x streams in as f32; cast to bf16 in-kernel (free under the MXU) so the
    # wrapper never does a separate HBM pass just to pad/cast x.
    x = x_ref[...].astype(jnp.bfloat16)

    # processor: Linear -> ReLU -> Linear -> (Dropout == identity in eval).
    h = jnp.dot(x, w1_ref[...], preferred_element_type=jnp.float32) + b1_ref[...]
    h = jnp.maximum(h, 0.0)
    feats = jnp.dot(h.astype(w2_ref.dtype), w2_ref[...],
                    preferred_element_type=jnp.float32) + b2_ref[...]

    # threat_detector: Linear -> ReLU -> Linear(·,1) -> Sigmoid.
    t = jnp.dot(feats.astype(w3_ref.dtype), w3_ref[...],
                preferred_element_type=jnp.float32) + b3_ref[...]
    t = jnp.maximum(t, 0.0)
    # (TB, h4) @ (h4, 1) wastes the MXU -> VPU multiply + XLU reduce instead.
    logit = jnp.sum(t * w4_ref[...], axis=-1, keepdims=True) + b4_ref[0]
    # Exact sigmoid on the tiny (TB, 1) tensor: keeps threat strictly in [0,1].
    threat = 1.0 / (1.0 + jnp.exp(-logit))

    feats_ref[...] = feats.astype(feats_ref.dtype)
    threat_ref[...] = threat.astype(threat_ref.dtype)


def prepare_params(params):
    """One-time parameter prep (call ONCE, not per forward).

    Casts the MXU-streamed weights to bf16, lays out the final layer's weight
    as a (1, h4) f32 row for the VPU reduce, and flattens b4 to an SMEM scalar.
    """
    return dict(
        w1=params["w1"].astype(jnp.bfloat16),
        w2=params["w2"].astype(jnp.bfloat16),
        w3=params["w3"].astype(jnp.bfloat16),
        w4_row=params["w4"].T.astype(jnp.float32),          # (1, h4)
        b1=params["b1"].astype(jnp.float32),
        b2=params["b2"].astype(jnp.float32),
        b3=params["b3"].astype(jnp.float32),
        b4=params["b4"].reshape(-1).astype(jnp.float32),     # (1,) SMEM scalar
    )


def _pick_tile_b(b_pad8, input_size, hidden, feat_dim, h4, weight_bytes,
                 feats_itemsize):
    """Batch tile from a VMEM budget + a minimum grid-step target."""
    per_row = (
        2 * input_size * 4                      # x tile (f32, 2 pipeline bufs)
        + input_size * 2                        # in-kernel bf16 copy of x
        + 2 * (feat_dim * feats_itemsize + 4)   # feats + threat out tiles (x2)
        + hidden * (4 + 2)                      # h (f32) + bf16 copy
        + feat_dim * (4 + 2)                    # feats (f32) + bf16 copy
        + h4 * (4 + 4)                          # t (f32) + product
    )
    avail = _VMEM_BUDGET_BYTES - weight_bytes   # weights single-buffered
    if avail > per_row * 8:
        tb_vmem = max(8, (avail // per_row) // 8 * 8)
    else:
        tb_vmem = 8
    # Keep several grid steps so v7x's two TCs both get work (and the pipeline
    # has something to overlap); don't pad the batch up to a huge fixed tile.
    tb_steps = max(8, _round_up(pl.cdiv(b_pad8, _TARGET_GRID_STEPS), 8))
    return int(min(tb_vmem, tb_steps, _MAX_TILE_B))


def deep_system_forward(x, prepared, *, feats_dtype=jnp.float32):
    """DeepSystem forward: returns (features [B, hidden//2], threat [B, 1]).

    x: [B, input_size] float32.  `prepared` comes from prepare_params().
    feats_dtype=jnp.bfloat16 halves the feature writeback if consumers allow.
    """
    B, input_size = x.shape
    hidden = prepared["w1"].shape[1]
    feat_dim = prepared["w2"].shape[1]
    h4 = prepared["w3"].shape[1]

    w1, w2, w3 = prepared["w1"], prepared["w2"], prepared["w3"]
    w4_row = prepared["w4_row"]
    b1, b2, b3, b4 = prepared["b1"], prepared["b2"], prepared["b3"], prepared["b4"]

    weight_bytes = sum(int(a.size) * a.dtype.itemsize
                       for a in (w1, b1, w2, b2, w3, b3, w4_row))

    b_pad8 = _round_up(B, 8)
    tb = _pick_tile_b(b_pad8, input_size, hidden, feat_dim, h4, weight_bytes,
                      jnp.dtype(feats_dtype).itemsize)
    b_pad = _round_up(b_pad8, tb)        # pads at most tb-1 rows (tb ~ B/8)
    x_p = x if b_pad == B else jnp.pad(x, ((0, b_pad - B), (0, 0)))

    grid = (b_pad // tb,)

    def batch_map(i):
        return (i, 0)

    def resident(i):
        return (0, 0)

    def res_spec(shape):
        # Revisited (constant-index) operand: a single VMEM buffer suffices.
        return pl.BlockSpec(shape, resident, pipeline_mode=pl.Buffered(1))

    in_specs = [
        pl.BlockSpec((tb, input_size), batch_map),            # x tile (f32)
        res_spec(w1.shape), res_spec(b1.shape),
        res_spec(w2.shape), res_spec(b2.shape),
        res_spec(w3.shape), res_spec(b3.shape),
        res_spec(w4_row.shape),
        pl.BlockSpec(memory_space=pltpu.MemorySpace.SMEM),    # b4 scalar
    ]
    out_specs = (
        pl.BlockSpec((tb, feat_dim), batch_map),              # features
        pl.BlockSpec((tb, 1), batch_map),                     # threat
    )
    out_shape = (
        jax.ShapeDtypeStruct((b_pad, feat_dim), feats_dtype),
        jax.ShapeDtypeStruct((b_pad, 1), jnp.float32),
    )

    cost = pl.CostEstimate(
        flops=2 * b_pad * (input_size * hidden + hidden * feat_dim
                           + feat_dim * h4 + h4),
        transcendentals=b_pad,
        bytes_accessed=(int(x_p.size) * 4 + weight_bytes
                        + b_pad * feat_dim * jnp.dtype(feats_dtype).itemsize
                        + b_pad * 4),
    )

    feats, threat = pl.pallas_call(
        deep_system_kernel,
        grid=grid,
        in_specs=in_specs,
        out_specs=out_specs,
        out_shape=out_shape,
        compiler_params=pltpu.CompilerParams(
            dimension_semantics=("parallel",),
            vmem_limit_bytes=_VMEM_LIMIT_BYTES),
        cost_estimate=cost,
    )(x_p, w1, b1, w2, b2, w3, b3, w4_row, b4)

    if b_pad != B:
        feats, threat = feats[:B], threat[:B]
    return feats, threat


def init_params(key, input_size, hidden_size):
    """Deterministic init matching the PyTorch module's layer shapes.

    PyTorch nn.Linear stores W as [out, in]; we store the transpose [in, out]
    so the kernel does x @ W + b. Init mimics PyTorch's U(-1/sqrt(fan_in), ...).
    """
    h2 = hidden_size // 2
    h4 = hidden_size // 4
    dims = [
        ("w1", (input_size, hidden_size)), ("b1", (1, hidden_size)),
        ("w2", (hidden_size, h2)),         ("b2", (1, h2)),
        ("w3", (h2, h4)),                  ("b3", (1, h4)),
        ("w4", (h4, 1)),                   ("b4", (1, 1)),
    ]
    params = {}
    for name, shape in dims:
        key, sub = jax.random.split(key)
        fan_in = shape[0] if name.startswith("w") else shape[1]
        bound = 1.0 / jnp.sqrt(jnp.asarray(fan_in, jnp.float32))
        params[name] = jax.random.uniform(
            sub, shape, jnp.float32, minval=-bound, maxval=bound)
    return params


def reference_forward(x, p):
    h = jnp.maximum(x @ p["w1"] + p["b1"], 0.0)
    feats = h @ p["w2"] + p["b2"]
    t = jnp.maximum(feats @ p["w3"] + p["b3"], 0.0)
    threat = jax.nn.sigmoid(t @ p["w4"] + p["b4"])
    return feats, threat


if __name__ == "__main__":
    INPUT_SIZE = 32
    HIDDEN_SIZE = 32
    BATCH = 4

    key = jax.random.PRNGKey(0)
    key, xk = jax.random.split(key)
    x = jax.random.normal(xk, (BATCH, INPUT_SIZE), dtype=jnp.float32)

    params = init_params(key, INPUT_SIZE, HIDDEN_SIZE)
    prepared = prepare_params(params)     # one-time weight cast / layout prep

    feats, threat = deep_system_forward(x, prepared)
    feats = jax.block_until_ready(feats)
    threat = jax.block_until_ready(threat)

    # Sanity check against a pure-JAX f32 reference (loose tolerance: the
    # kernel streams bf16 weights/activations with f32 accumulation; consumers
    # of `feats` should expect bf16-level rounding vs the f32 PyTorch module).
    ref_feats, ref_threat = reference_forward(x, params)
    assert feats.shape == (BATCH, HIDDEN_SIZE // 2)
    assert threat.shape == (BATCH, 1)
    assert jnp.allclose(feats, ref_feats, atol=5e-2, rtol=5e-2)
    assert jnp.allclose(threat, ref_threat, atol=5e-2, rtol=5e-2)
    assert bool(jnp.all((threat >= 0.0) & (threat <= 1.0)))

    print("KERNEL_OK")
</pallas_src>

<mosaic_0001>
module attributes {stable_mosaic.version = 11 : i64} {
  func.func @deep_system_kernel(%arg0: i32, %arg1: memref<8x32xf32, #tpu.memory_space<vmem>>, %arg2: memref<32x32xbf16, #tpu.memory_space<vmem>>, %arg3: memref<1x32xf32, #tpu.memory_space<vmem>>, %arg4: memref<32x16xbf16, #tpu.memory_space<vmem>>, %arg5: memref<1x16xf32, #tpu.memory_space<vmem>>, %arg6: memref<16x8xbf16, #tpu.memory_space<vmem>>, %arg7: memref<1x8xf32, #tpu.memory_space<vmem>>, %arg8: memref<1x8xf32, #tpu.memory_space<vmem>>, %arg9: memref<1xf32, #tpu.memory_space<smem>>, %arg10: memref<8x16xf32, #tpu.memory_space<vmem>>, %arg11: memref<8x1xf32, #tpu.memory_space<vmem>>) attributes {dimension_semantics = [#tpu.dimension_semantics<parallel>], iteration_bounds = array<i64: 1>, scalar_prefetch = 0 : i64, scratch_operands = 0 : i64, tpu.core_type = #tpu.core_type<tc>, window_params = [{transform_indices = @transform_0, window_bounds = array<i64: 8, 32>}, {pipeline_mode = #tpu.pipeline_mode<synchronous>, transform_indices = @transform_1, window_bounds = array<i64: 32, 32>}, {pipeline_mode = #tpu.pipeline_mode<synchronous>, transform_indices = @transform_2, window_bounds = array<i64: 1, 32>}, {pipeline_mode = #tpu.pipeline_mode<synchronous>, transform_indices = @transform_3, window_bounds = array<i64: 32, 16>}, {pipeline_mode = #tpu.pipeline_mode<synchronous>, transform_indices = @transform_4, window_bounds = array<i64: 1, 16>}, {pipeline_mode = #tpu.pipeline_mode<synchronous>, transform_indices = @transform_5, window_bounds = array<i64: 16, 8>}, {pipeline_mode = #tpu.pipeline_mode<synchronous>, transform_indices = @transform_6, window_bounds = array<i64: 1, 8>}, {pipeline_mode = #tpu.pipeline_mode<synchronous>, transform_indices = @transform_7, window_bounds = array<i64: 1, 8>}, {transform_indices = @transform_8, window_bounds = array<i64: 1>}, {transform_indices = @transform_9, window_bounds = array<i64: 8, 16>}, {transform_indices = @transform_10, window_bounds = array<i64: 8, 1>}]} {
    %c0 = arith.constant 0 : index
    %c0_0 = arith.constant 0 : index
    %0 = vector.load %arg1[%c0, %c0_0] : memref<8x32xf32, #tpu.memory_space<vmem>>, vector<8x32xf32>
    %1 = arith.truncf %0 : vector<8x32xf32> to vector<8x32xbf16>
    %c0_1 = arith.constant 0 : index
    %c0_2 = arith.constant 0 : index
    %2 = vector.load %arg2[%c0_1, %c0_2] : memref<32x32xbf16, #tpu.memory_space<vmem>>, vector<32x32xbf16>
    %cst = arith.constant dense<0.000000e+00> : vector<8x32xf32>
    %3 = tpu.matmul %1, %2, %cst {dimension_numbers = #tpu.dot_dimension_numbers<[1], [0], [0], [1], [0, 0, 1, 1], [], []>} : vector<8x32xbf16>, vector<32x32xbf16>, vector<8x32xf32> -> vector<8x32xf32>
    %c0_3 = arith.constant 0 : index
    %c0_4 = arith.constant 0 : index
    %4 = vector.load %arg3[%c0_3, %c0_4] : memref<1x32xf32, #tpu.memory_space<vmem>>, vector<1x32xf32>
    %5 = vector.broadcast %4 : vector<1x32xf32> to vector<8x32xf32>
    %6 = arith.addf %3, %5 : vector<8x32xf32>
    %cst_5 = arith.constant 0.000000e+00 : f32
    %7 = vector.broadcast %cst_5 : f32 to vector<8x32xf32>
    %8 = arith.maximumf %6, %7 : vector<8x32xf32>
    %9 = arith.truncf %8 : vector<8x32xf32> to vector<8x32xbf16>
    %c0_6 = arith.constant 0 : index
    %c0_7 = arith.constant 0 : index
    %10 = vector.load %arg4[%c0_6, %c0_7] : memref<32x16xbf16, #tpu.memory_space<vmem>>, vector<32x16xbf16>
    %cst_8 = arith.constant dense<0.000000e+00> : vector<8x16xf32>
    %11 = tpu.matmul %9, %10, %cst_8 {dimension_numbers = #tpu.dot_dimension_numbers<[1], [0], [0], [1], [0, 0, 1, 1], [], []>} : vector<8x32xbf16>, vector<32x16xbf16>, vector<8x16xf32> -> vector<8x16xf32>
    %c0_9 = arith.constant 0 : index
    %c0_10 = arith.constant 0 : index
    %12 = vector.load %arg5[%c0_9, %c0_10] : memref<1x16xf32, #tpu.memory_space<vmem>>, vector<1x16xf32>
    %13 = vector.broadcast %12 : vector<1x16xf32> to vector<8x16xf32>
    %14 = arith.addf %11, %13 : vector<8x16xf32>
    %15 = arith.truncf %14 : vector<8x16xf32> to vector<8x16xbf16>
    %c0_11 = arith.constant 0 : index
    %c0_12 = arith.constant 0 : index
    %16 = vector.load %arg6[%c0_11, %c0_12] : memref<16x8xbf16, #tpu.memory_space<vmem>>, vector<16x8xbf16>
    %cst_13 = arith.constant dense<0.000000e+00> : vector<8x8xf32>
    %17 = tpu.matmul %15, %16, %cst_13 {dimension_numbers = #tpu.dot_dimension_numbers<[1], [0], [0], [1], [0, 0, 1, 1], [], []>} : vector<8x16xbf16>, vector<16x8xbf16>, vector<8x8xf32> -> vector<8x8xf32>
    %c0_14 = arith.constant 0 : index
    %c0_15 = arith.constant 0 : index
    %18 = vector.load %arg7[%c0_14, %c0_15] : memref<1x8xf32, #tpu.memory_space<vmem>>, vector<1x8xf32>
    %19 = vector.broadcast %18 : vector<1x8xf32> to vector<8x8xf32>
    %20 = arith.addf %17, %19 : vector<8x8xf32>
    %cst_16 = arith.constant 0.000000e+00 : f32
    %21 = vector.broadcast %cst_16 : f32 to vector<8x8xf32>
    %22 = arith.maximumf %20, %21 : vector<8x8xf32>
    %c0_17 = arith.constant 0 : index
    %c0_18 = arith.constant 0 : index
    %23 = vector.load %arg8[%c0_17, %c0_18] : memref<1x8xf32, #tpu.memory_space<vmem>>, vector<1x8xf32>
    %24 = vector.broadcast %23 : vector<1x8xf32> to vector<8x8xf32>
    %25 = arith.mulf %22, %24 : vector<8x8xf32>
    %cst_19 = arith.constant dense<0.000000e+00> : vector<8xf32>
    %26 = vector.multi_reduction <add>, %25, %cst_19 [1] : vector<8x8xf32> to vector<8xf32>
    %27 = vector.shape_cast %26 : vector<8xf32> to vector<8x1xf32>
    %c0_20 = arith.constant 0 : index
    %28 = memref.load %arg9[%c0_20] : memref<1xf32, #tpu.memory_space<smem>>
    %29 = vector.broadcast %28 : f32 to vector<8x1xf32>
    %30 = arith.addf %27, %29 : vector<8x1xf32>
    %cst_21 = arith.constant 0.000000e+00 : f32
    %31 = vector.broadcast %cst_21 : f32 to vector<8x1xf32>
    %32 = arith.subf %31, %30 : vector<8x1xf32>
    %33 = math.exp %32 : vector<8x1xf32>
    %cst_22 = arith.constant 1.000000e+00 : f32
    %34 = vector.broadcast %cst_22 : f32 to vector<8x1xf32>
    %35 = arith.addf %34, %33 : vector<8x1xf32>
    %cst_23 = arith.constant 1.000000e+00 : f32
    %36 = vector.broadcast %cst_23 : f32 to vector<8x1xf32>
    %37 = arith.divf %36, %35 : vector<8x1xf32>
    %c0_24 = arith.constant 0 : index
    %c0_25 = arith.constant 0 : index
    %38 = vector.load %arg10[%c0_24, %c0_25] : memref<8x16xf32, #tpu.memory_space<vmem>>, vector<8x16xf32>
    tpu.vector_store %arg10[%c0_24, %c0_25], %14 {strides = array<i32>} : memref<8x16xf32, #tpu.memory_space<vmem>>, vector<8x16xf32>,
    %c0_26 = arith.constant 0 : index
    %c0_27 = arith.constant 0 : index
    %39 = vector.load %arg11[%c0_26, %c0_27] : memref<8x1xf32, #tpu.memory_space<vmem>>, vector<8x1xf32>
    tpu.vector_store %arg11[%c0_26, %c0_27], %37 {strides = array<i32>} : memref<8x1xf32, #tpu.memory_space<vmem>>, vector<8x1xf32>,
    return
  }
  func.func @transform_0(%arg0: i32) -> (i32, i32) {
    %c0_i32 = arith.constant 0 : i32
    %c0_i32_0 = arith.constant 0 : i32
    return %arg0, %c0_i32 : i32, i32
  }
  func.func @transform_1(%arg0: i32) -> (i32, i32) {
    %c0_i32 = arith.constant 0 : i32
    %c0_i32_0 = arith.constant 0 : i32
    %c0_i32_1 = arith.constant 0 : i32
    return %c0_i32, %c0_i32_0 : i32, i32
  }
  func.func @transform_2(%arg0: i32) -> (i32, i32) {
    %c0_i32 = arith.constant 0 : i32
    %c0_i32_0 = arith.constant 0 : i32
    %c0_i32_1 = arith.constant 0 : i32
    return %c0_i32, %c0_i32_0 : i32, i32
  }
  func.func @transform_3(%arg0: i32) -> (i32, i32) {
    %c0_i32 = arith.constant 0 : i32
    %c0_i32_0 = arith.constant 0 : i32
    %c0_i32_1 = arith.constant 0 : i32
    return %c0_i32, %c0_i32_0 : i32, i32
  }
  func.func @transform_4(%arg0: i32) -> (i32, i32) {
    %c0_i32 = arith.constant 0 : i32
    %c0_i32_0 = arith.constant 0 : i32
    %c0_i32_1 = arith.constant 0 : i32
    return %c0_i32, %c0_i32_0 : i32, i32
  }
  func.func @transform_5(%arg0: i32) -> (i32, i32) {
    %c0_i32 = arith.constant 0 : i32
    %c0_i32_0 = arith.constant 0 : i32
    %c0_i32_1 = arith.constant 0 : i32
    return %c0_i32, %c0_i32_0 : i32, i32
  }
  func.func @transform_6(%arg0: i32) -> (i32, i32) {
    %c0_i32 = arith.constant 0 : i32
    %c0_i32_0 = arith.constant 0 : i32
    %c0_i32_1 = arith.constant 0 : i32
    return %c0_i32, %c0_i32_0 : i32, i32
  }
  func.func @transform_7(%arg0: i32) -> (i32, i32) {
    %c0_i32 = arith.constant 0 : i32
    %c0_i32_0 = arith.constant 0 : i32
    %c0_i32_1 = arith.constant 0 : i32
    return %c0_i32, %c0_i32_0 : i32, i32
  }
  func.func @transform_8(%arg0: i32) -> i32 {
    %c0_i32 = arith.constant 0 : i32
    %c0_i32_0 = arith.constant 0 : i32
    return %c0_i32 : i32
  }
  func.func @transform_9(%arg0: i32) -> (i32, i32) {
    %c0_i32 = arith.constant 0 : i32
    %c0_i32_0 = arith.constant 0 : i32
    return %arg0, %c0_i32 : i32, i32
  }
  func.func @transform_10(%arg0: i32) -> (i32, i32) {
    %c0_i32 = arith.constant 0 : i32
    %c0_i32_0 = arith.constant 0 : i32
    return %arg0, %c0_i32 : i32, i32
  }
}

</mosaic_0001>

<bundles_post_ra>
// kernel: tpu_custom_call.1
= control target key start
LH: loop header
LB: loop body
LE: loop exit
PB: predicated region body
PF: predicated region fallthrough
CT: control target
= control target key end

     0   :  { %s357_s0 = inlined_call_operand.vmem [shape: f32[8,32], index: 0, kind: input, shape index: {}]   ;;  %s358_s1 = inlined_call_operand.vmem [shape: bf16[32,32], index: 1, kind: input, shape index: {}]   ;;  %s359_s2 = inlined_call_operand.vmem [shape: f32[1,32], index: 2, kind: input, shape index: {}]   ;;  %s360_s3 = inlined_call_operand.vmem [shape: bf16[32,16], index: 3, kind: input, shape index: {}]   ;;  %s361_s4 = inlined_call_operand.vmem [shape: f32[1,16], index: 4, kind: input, shape index: {}]   ;;  %s362_s5 = inlined_call_operand.vmem [shape: bf16[16,8], index: 5, kind: input, shape index: {}]   ;;  %s363_s6 = inlined_call_operand.vmem [shape: f32[1,8], index: 6, kind: input, shape index: {}]   ;;  %s364_s7 = inlined_call_operand.vmem [shape: f32[1,8], index: 7, kind: input, shape index: {}]   ;;  %s365_s8 = inlined_call_operand.<no memory space> [shape: f32[1], index: 8, kind: input, shape index: {}]   ;;  %s366_s9 = inlined_call_operand.hbm [shape: f32[8,16], index: 9, kind: output, shape index: {0}]   ;;  %s367_s10 = inlined_call_operand.vmem [shape: f32[8,1], index: 10, kind: output, shape index: {1}]  }
   0x1   :  { %v223_v0 = vld [vmem:[%s358_s1 + $0x8] sm:$0xff]  ;;  %v222_v1 = vld [vmem:[%s358_s1] sm:$0xff] }
   0x2   :  { %v37_v2 = vld [vmem:[%s357_s0] sm:$0xff]  ;;  %69 = vmatpush.bf16.msra.mxu0 %v223_v0 }
   0x3   :  { %17 = vsyncpa [#allocation4], 0  ;;  %v38_v3 = vpack.c.bf16 %v37_v2, %v37_v2  ;;  %vm59_vm0 = vcmask 261120   ;;  %v225_v4 = vld [vmem:[%s360_s3 + $0x8] sm:$0xff]  ;;  %v224_v5 = vld [vmem:[%s360_s3] sm:$0xff]  ;;  %vm127_vm1 = vcmask 130048   ;;  %v155_v26 = vstv %s365_s8 }
   0x4   :  { %107 = vmatpush.bf16.msra.mxu1 %v225_v4  ;;  %v228_v6 = vld [vmem:[%s359_s2] ss:$0 sm:$0xff]  ;;  %vm150_vm2 = vcmask 64512   ;;  %s186_s11 = sshll.u32 %s366_s9, 4  ;;  %vm177_vm6 = vcmask 7168   ;;  %s187_s11 = int_to_ptr.hbm [resolvable:$true] %s186_s11 }
   0x5   :  { %v226_v12 = vld [vmem:[%s362_s5] sm:$0xff] }
   0x6   :  { %70 = vmatpush.bf16.msra.mxu0 %v222_v1  ;;  %138 = vmatpush.bf16.msra.mxu2 %v226_v12  ;;  %v229_v13 = vld [vmem:[%s361_s4] ss:$0 sm:$0xff]  ;;  %s262_s4 = smov [#allocation3]  }
   0x7   :  { %v230_v18 = vld [vmem:[%s363_s6] ss:$0 sm:$0xff]  ;;  %s184_s28 = sshll.u32 %s262_s4, 4  ;;  %s185_s28 = int_to_ptr.vmem [resolvable:$true] %s184_s28 }
   0x8   :  { %108 = vmatpush.bf16.msra.mxu1 %v224_v5  ;;  %v231_v21 = vld [vmem:[%s364_s7] ss:$0 sm:$0xff] }
   0x9   :  { %207 = vmatmul.msk.bf16.vlgmr.msra.gmra.mxu0 %vm59_vm0, %v38_v3 }
  0x86   :  { %v72_v7 = vpop.f32.mrf.mxu0 }
  0x87   :  { %v73_v8 = vadd.f32 %v228_v6, %v72_v7 }
  0x89   :  { %v76_v9 = vmax.f32 %v73_v8, 0.0 }
  0x8b   :  { %v77_v10 = vpack.c.bf16 %v76_v9, %v76_v9 }
  0x8d   :  { %216 = vmatmul.msk.bf16.vlgmr.msra.gmra.mxu1 %vm59_vm0, %v77_v10 }
  0x8e   :  { %v74_v11 = vpop.f32.mrf.mxu0 }
 0x10a   :  { %v110_v14 = vpop.f32.mrf.mxu1 }
 0x10b   :  { %v111_v15 = vadd.f32 %v229_v13, %v110_v14 }
 0x10d   :  { %v114_v16 = vpack.c.bf16 %v111_v15, %v111_v15  ;;  %176 = vst.msk [vmem:[#allocation3] sm:$0xff] %vm127_vm1, %v111_v15 }
 0x10e   :  { %189 = dma.vmem_to_hbm [thread:$0]  %s185_s28, 128, %s187_s11, [#allocation4]  }
 0x10f   :  { %221 = vmatmul.msk.bf16.vlgmr.msra.gmra.mxu2 %vm127_vm1, %v114_v16 }
 0x112   :  { %v112_v17 = vpop.f32.mrf.mxu1 }
 0x192   :  { %v140_v19 = vpop.f32.mrf.mxu2 }
 0x193   :  { %v141_v20 = vadd.f32 %v230_v18, %v140_v19 }
 0x195   :  { %v144_v22 = vmax.f32 %v141_v20, 0.0 }
 0x197   :  { %v149_v23 = vmul.f32 %v231_v21, %v144_v22 }
 0x199   :  { %v151_v24 = vsel %vm150_vm2, %v149_v23, 0.0 }
 0x19a   :  { %v142_v25 = vpop.f32.mrf.mxu2  ;;  %152 = vadd.xlane.f32.xlu0 %v151_v24 }
 0x20d   :  { %v153_v27 = vpop.xlane.xlu0 %152 }
 0x20e   :  { %v156_v28 = vadd.f32 %v155_v26, %v153_v27 }
 0x210   :  { %v157_v29 = vsub.f32 0.0, %v156_v28 }
 0x212   :  { %v158_v30 = vmul.f32 1.442695, %v157_v29 }
 0x214   :  { %232 = vpow2.f32 %v158_v30 }
 0x21a   :  { %v233_v31 = vpop.eup %232 }
 0x21b   :  { %v160_v32 = vadd.f32 1.0, %v233_v31 }
 0x21d   :  { %234 = vrcp.f32 %v160_v32  ;;  %v172_v36 = vand.u32 2147483648, %v160_v32  ;;  %v170_v38 = vand.u32 2147483647, %v160_v32  ;;  %vm166_vm4 = vweird.f32 %v160_v32 }
 0x21f   :  { %v173_v40 = vor.u32 1.1754944e-38, %v172_v36  ;;  %vm171_vm7 = vcmp.eq.f32.partialorder %v170_v38, 8.507059e+37 }
 0x223   :  { %v235_v33 = vpop.eup %234 }
 0x224   :  { %v162_v34 = vmul.f32 %v235_v33, %v160_v32  ;;  %vm167_vm3 = vweird.f32 %v235_v33 }
 0x225   :  { %vm168_vm5 = vmor %vm166_vm4, %vm167_vm3 }
 0x226   :  { %v163_v35 = vsub.f32 1.0, %v162_v34 }
 0x228   :  { %v164_v37 = vmul.f32 %v235_v33, %v163_v35 }
 0x22a   :  { %v165_v39 = vadd.f32 %v235_v33, %v164_v37 }
 0x22c   :  { %v169_v41 = vsel %vm168_vm5, %v235_v33, %v165_v39 }
 0x22d   :  { %v174_v42 = vsel %vm171_vm7, %v173_v40, %v169_v41 }
 0x22e   :  { %178 = vst.msk [vmem:[%s367_s10] sm:$0xff] %vm177_vm6, %v174_v42 }
 0x22f   :  { %260 = dma.done.wait [#allocation4], 128  }
 0x230   :  { %261 = vsyncadd [#allocation4], 4294967168 }
 0x231   :  { %198 = vsyncpa [#allocation4], 1 }

</bundles_post_ra>
